<compile_context>
chip_gen: v6e
topology: v6e:2x2x1
jax: 0.10.0
libtpu: 0.0.40
codegen_flags: <defaults>
</compile_context>

<pallas_src>
import functools
import math

import jax
import jax.numpy as jnp
import numpy as np
from jax.experimental import pallas as pl
from jax.experimental.pallas import tpu as pltpu


def _conv_rows_kernel(x_ref, w_ref, b_ref, o_ref, *, KH, Ho, Nb, WpC, WoC,
                      apply_relu):
    """Fused conv + bias (+ ReLU) for one batch block.

    x_ref: (Nb, Hp, Wp*Cin)     padded rows, (W, Cin) packed on the lane axis
    w_ref: (KH, Wp*Cin, Wo*Cout) banded weights (kj shift folded in)
    b_ref: (1, Wo*Cout)         bias tiled over Wo
    o_ref: (Nb, Ho, Wo*Cout)    lane-dense output block
    """
    acc = jnp.zeros((Nb * Ho, WoC), jnp.float32)
    # Static unroll over the KH row taps; each tap is one well-filled MXU matmul.
    for ki in range(KH):
        if Nb == 1:
            rows = x_ref[0, ki:ki + Ho, :]                       # (Ho, WpC)
        else:
            rows = x_ref[:, ki:ki + Ho, :].reshape(Nb * Ho, WpC)
        acc += jnp.dot(rows, w_ref[ki], preferred_element_type=jnp.float32)
    acc = acc + b_ref[...]                                       # (1, WoC) broadcast
    if apply_relu:
        acc = jnp.maximum(acc, 0.0)
    o_ref[...] = acc.reshape(Nb, Ho, WoC).astype(o_ref.dtype)


def conv2d_relu_pallas(x_nchw, weight_oihw, bias, *, stride=1, kernel_size=3,
                       same_padding=True, dilation=1, nl='relu', bn=False,
                       batch_block=1):
    """Forward pass of the PyTorch Conv2d module (conv -> relu, bn=False path).

    x_nchw:      (N, Cin, H, W)   float32
    weight_oihw: (Cout, Cin, KH, KW)
    bias:        (Cout,)
    returns      (N, Cout, Ho, Wo) float32
    """
    if stride != 1 or dilation != 1:
        # TODO(synk): stride>1 / dilated branch of the module not implemented.
        raise NotImplementedError("only stride=1, dilation=1 supported")
    if bn:
        # TODO(synk): bn=True branch (training-mode BatchNorm2d, momentum=0) not implemented.
        raise NotImplementedError("bn=True not supported")
    if nl == 'relu':
        apply_relu = True
    elif nl is None or nl == 'none':
        apply_relu = False
    else:
        # TODO(synk): NL='prelu' branch not implemented (module default is 'relu').
        raise NotImplementedError(f"NL={nl!r} not supported")

    N, Cin, H, W = x_nchw.shape
    Cout, Cin_w, KH, KW = weight_oihw.shape
    assert Cin == Cin_w and KH == kernel_size and KW == kernel_size
    assert N % batch_block == 0, "batch_block must divide N"
    Nb = batch_block

    # Matches the module: padding = int((kernel_size - 1) / 2) if same_padding else 0.
    pad = (kernel_size - 1) // 2 if same_padding else 0
    Hp, Wp = H + 2 * pad, W + 2 * pad
    Ho, Wo = Hp - (KH - 1), Wp - (KW - 1)
    WpC, WoC = Wp * Cin, Wo * Cout
    dtype = x_nchw.dtype

    # ---- glue (plain JAX): layout + padding + banded-weight construction ----
    # TODO(synk): keep the surrounding network NHWC end-to-end to drop these
    # transpose/pad HBM passes; at these small shapes they are negligible.
    x_nhwc = jnp.transpose(x_nchw, (0, 2, 3, 1))                  # NHWC
    x_pad = jnp.pad(x_nhwc, ((0, 0), (pad, pad), (pad, pad), (0, 0)))
    x_rows = x_pad.reshape(N, Hp, WpC)                            # pack (W, Cin) on lanes

    # Banded ("Toeplitz along W") weight: folds the kj shift into the matmul:
    #   w_big[ki, w*Cin + cin, wo*Cout + cout] = weight[cout, cin, ki, w - wo]
    #   for 0 <= w - wo < KW, else 0.
    w_hwio = jnp.transpose(weight_oihw, (2, 3, 1, 0)).astype(dtype)   # (KH, KW, Cin, Cout)
    shift = np.zeros((KW, Wp, Wo), np.float32)
    for kj in range(KW):
        shift[kj, np.arange(Wo) + kj, np.arange(Wo)] = 1.0
    w_big = jnp.einsum('ijco,jpq->ipcqo', w_hwio, jnp.asarray(shift, dtype))
    w_big = w_big.reshape(KH, WpC, WoC)                           # (KH, Wp*Cin, Wo*Cout)
    b_tiled = jnp.tile(bias.astype(dtype), Wo).reshape(1, WoC)    # bias[cout] at wo*Cout+cout

    kernel = functools.partial(
        _conv_rows_kernel, KH=KH, Ho=Ho, Nb=Nb, WpC=WpC, WoC=WoC,
        apply_relu=apply_relu)

    out_rows = pl.pallas_call(
        kernel,
        out_shape=jax.ShapeDtypeStruct((N, Ho, WoC), dtype),
        grid_spec=pltpu.PrefetchScalarGridSpec(
            num_scalar_prefetch=0,
            grid=(N // Nb,),
            in_specs=[
                pl.BlockSpec((Nb, Hp, WpC), lambda n: (n, 0, 0)),
                pl.BlockSpec((KH, WpC, WoC), lambda n: (0, 0, 0)),
                pl.BlockSpec((1, WoC), lambda n: (0, 0)),
            ],
            out_specs=pl.BlockSpec((Nb, Ho, WoC), lambda n: (n, 0, 0)),
        ),
        compiler_params=pltpu.CompilerParams(
            dimension_semantics=("parallel",)),
    )(x_rows, w_big, b_tiled)

    out_nhwc = out_rows.reshape(N, Ho, Wo, Cout)
    return jnp.transpose(out_nhwc, (0, 3, 1, 2))                  # back to NCHW


def _reference(x_nchw, weight_oihw, bias, pad, nl='relu'):
    out = jax.lax.conv_general_dilated(
        x_nchw, weight_oihw, window_strides=(1, 1),
        padding=((pad, pad), (pad, pad)),
        dimension_numbers=('NCHW', 'OIHW', 'NCHW'),
        precision=jax.lax.Precision.HIGHEST)
    out = out + bias.reshape(1, -1, 1, 1)
    if nl == 'relu':
        out = jnp.maximum(out, 0.0)
    return out


if __name__ == "__main__":
    # Module config: Conv2d(in_channels=4, out_channels=8, kernel_size=3,
    #                       stride=1, NL='relu', same_padding=True, bn=False)
    N, Cin, H, W = 2, 4, 16, 16
    Cout, K = 8, 3

    key = jax.random.PRNGKey(0)
    kx, kw, kb = jax.random.split(key, 3)

    x = jax.random.normal(kx, (N, Cin, H, W), dtype=jnp.float32)

    # Deterministic init mimicking PyTorch nn.Conv2d defaults (uniform +/- 1/sqrt(fan_in)).
    fan_in = Cin * K * K
    wbound = math.sqrt(1.0 / fan_in)
    weight = jax.random.uniform(kw, (Cout, Cin, K, K), jnp.float32,
                                minval=-wbound, maxval=wbound)
    bias = jax.random.uniform(kb, (Cout,), jnp.float32,
                              minval=-wbound, maxval=wbound)

    out = conv2d_relu_pallas(x, weight, bias, kernel_size=K,
                             same_padding=True, nl='relu', batch_block=1)
    out = jax.block_until_ready(out)

    ref = _reference(x, weight, bias, pad=(K - 1) // 2, nl='relu')
    np.testing.assert_allclose(np.asarray(out), np.asarray(ref),
                               rtol=1e-3, atol=1e-3)
    print("KERNEL_OK")
</pallas_src>

<mosaic_0001>
module attributes {stable_mosaic.version = 11 : i64} {
  func.func @_conv_rows_kernel(%arg0: i32, %arg1: memref<1x18x72xf32, #tpu.memory_space<vmem>>, %arg2: memref<3x72x128xf32, #tpu.memory_space<vmem>>, %arg3: memref<1x128xf32, #tpu.memory_space<vmem>>, %arg4: memref<1x16x128xf32, #tpu.memory_space<vmem>>) attributes {dimension_semantics = [#tpu.dimension_semantics<parallel>], iteration_bounds = array<i64: 2>, scalar_prefetch = 0 : i64, scratch_operands = 0 : i64, tpu.core_type = #tpu.core_type<tc>, window_params = [{transform_indices = @transform_0, window_bounds = array<i64: 1, 18, 72>}, {pipeline_mode = #tpu.pipeline_mode<synchronous>, transform_indices = @transform_1, window_bounds = array<i64: 3, 72, 128>}, {pipeline_mode = #tpu.pipeline_mode<synchronous>, transform_indices = @transform_2, window_bounds = array<i64: 1, 128>}, {transform_indices = @transform_3, window_bounds = array<i64: 1, 16, 128>}]} {
    %cst = arith.constant 0.000000e+00 : f32
    %0 = vector.broadcast %cst : f32 to vector<16x128xf32>
    %c0 = arith.constant 0 : index
    %c0_0 = arith.constant 0 : index
    %c0_1 = arith.constant 0 : index
    %1 = vector.load %arg1[%c0, %c0_0, %c0_1] : memref<1x18x72xf32, #tpu.memory_space<vmem>>, vector<1x16x72xf32>
    %2 = vector.shape_cast %1 : vector<1x16x72xf32> to vector<16x72xf32>
    %c0_2 = arith.constant 0 : index
    %c0_3 = arith.constant 0 : index
    %c0_4 = arith.constant 0 : index
    %3 = vector.load %arg2[%c0_2, %c0_3, %c0_4] : memref<3x72x128xf32, #tpu.memory_space<vmem>>, vector<1x72x128xf32>
    %4 = vector.shape_cast %3 : vector<1x72x128xf32> to vector<72x128xf32>
    %cst_5 = arith.constant dense<0.000000e+00> : vector<16x128xf32>
    %5 = tpu.matmul %2, %4, %cst_5 {dimension_numbers = #tpu.dot_dimension_numbers<[1], [0], [0], [1], [0, 0, 1, 1], [], []>} : vector<16x72xf32>, vector<72x128xf32>, vector<16x128xf32> -> vector<16x128xf32>
    %6 = arith.addf %0, %5 : vector<16x128xf32>
    %c0_6 = arith.constant 0 : index
    %c1 = arith.constant 1 : index
    %c0_7 = arith.constant 0 : index
    %7 = vector.load %arg1[%c0_6, %c1, %c0_7] : memref<1x18x72xf32, #tpu.memory_space<vmem>>, vector<1x16x72xf32>
    %8 = vector.shape_cast %7 : vector<1x16x72xf32> to vector<16x72xf32>
    %c1_8 = arith.constant 1 : index
    %c0_9 = arith.constant 0 : index
    %c0_10 = arith.constant 0 : index
    %9 = vector.load %arg2[%c1_8, %c0_9, %c0_10] : memref<3x72x128xf32, #tpu.memory_space<vmem>>, vector<1x72x128xf32>
    %10 = vector.shape_cast %9 : vector<1x72x128xf32> to vector<72x128xf32>
    %cst_11 = arith.constant dense<0.000000e+00> : vector<16x128xf32>
    %11 = tpu.matmul %8, %10, %cst_11 {dimension_numbers = #tpu.dot_dimension_numbers<[1], [0], [0], [1], [0, 0, 1, 1], [], []>} : vector<16x72xf32>, vector<72x128xf32>, vector<16x128xf32> -> vector<16x128xf32>
    %12 = arith.addf %6, %11 : vector<16x128xf32>
    %c0_12 = arith.constant 0 : index
    %c2 = arith.constant 2 : index
    %c0_13 = arith.constant 0 : index
    %13 = vector.load %arg1[%c0_12, %c2, %c0_13] : memref<1x18x72xf32, #tpu.memory_space<vmem>>, vector<1x16x72xf32>
    %14 = vector.shape_cast %13 : vector<1x16x72xf32> to vector<16x72xf32>
    %c2_14 = arith.constant 2 : index
    %c0_15 = arith.constant 0 : index
    %c0_16 = arith.constant 0 : index
    %15 = vector.load %arg2[%c2_14, %c0_15, %c0_16] : memref<3x72x128xf32, #tpu.memory_space<vmem>>, vector<1x72x128xf32>
    %16 = vector.shape_cast %15 : vector<1x72x128xf32> to vector<72x128xf32>
    %cst_17 = arith.constant dense<0.000000e+00> : vector<16x128xf32>
    %17 = tpu.matmul %14, %16, %cst_17 {dimension_numbers = #tpu.dot_dimension_numbers<[1], [0], [0], [1], [0, 0, 1, 1], [], []>} : vector<16x72xf32>, vector<72x128xf32>, vector<16x128xf32> -> vector<16x128xf32>
    %18 = arith.addf %12, %17 : vector<16x128xf32>
    %c0_18 = arith.constant 0 : index
    %c0_19 = arith.constant 0 : index
    %19 = vector.load %arg3[%c0_18, %c0_19] : memref<1x128xf32, #tpu.memory_space<vmem>>, vector<1x128xf32>
    %20 = vector.broadcast %19 : vector<1x128xf32> to vector<16x128xf32>
    %21 = arith.addf %18, %20 : vector<16x128xf32>
    %cst_20 = arith.constant 0.000000e+00 : f32
    %22 = vector.broadcast %cst_20 : f32 to vector<16x128xf32>
    %23 = arith.maximumf %21, %22 : vector<16x128xf32>
    %24 = vector.shape_cast %23 : vector<16x128xf32> to vector<1x16x128xf32>
    %c0_21 = arith.constant 0 : index
    %c0_22 = arith.constant 0 : index
    %c0_23 = arith.constant 0 : index
    %25 = vector.load %arg4[%c0_21, %c0_22, %c0_23] : memref<1x16x128xf32, #tpu.memory_space<vmem>>, vector<1x16x128xf32>
    tpu.vector_store %arg4[%c0_21, %c0_22, %c0_23], %24 {strides = array<i32>} : memref<1x16x128xf32, #tpu.memory_space<vmem>>, vector<1x16x128xf32>,
    return
  }
  func.func @transform_0(%arg0: i32) -> (i32, i32, i32) {
    %c0_i32 = arith.constant 0 : i32
    %c0_i32_0 = arith.constant 0 : i32
    %c0_i32_1 = arith.constant 0 : i32
    return %arg0, %c0_i32, %c0_i32_0 : i32, i32, i32
  }
  func.func @transform_1(%arg0: i32) -> (i32, i32, i32) {
    %c0_i32 = arith.constant 0 : i32
    %c0_i32_0 = arith.constant 0 : i32
    %c0_i32_1 = arith.constant 0 : i32
    %c0_i32_2 = arith.constant 0 : i32
    return %c0_i32, %c0_i32_0, %c0_i32_1 : i32, i32, i32
  }
  func.func @transform_2(%arg0: i32) -> (i32, i32) {
    %c0_i32 = arith.constant 0 : i32
    %c0_i32_0 = arith.constant 0 : i32
    %c0_i32_1 = arith.constant 0 : i32
    return %c0_i32, %c0_i32_0 : i32, i32
  }
  func.func @transform_3(%arg0: i32) -> (i32, i32, i32) {
    %c0_i32 = arith.constant 0 : i32
    %c0_i32_0 = arith.constant 0 : i32
    %c0_i32_1 = arith.constant 0 : i32
    return %arg0, %c0_i32, %c0_i32_0 : i32, i32, i32
  }
}

</mosaic_0001>

<bundles_post_ra>
// kernel: tpu_custom_call.1
= control target key start
LH: loop header
LB: loop body
LE: loop exit
PB: predicated region body
PF: predicated region fallthrough
CT: control target
= control target key end

     0   :  { %8 = vsyncpa [#allocation3], 0  ;;  %s995_s0 = inlined_call_operand.vmem [shape: f32[2,18,72], index: 0, kind: input, shape index: {}]   ;;  %s996_s1 = inlined_call_operand.hbm [shape: f32[3,72,128], index: 1, kind: input, shape index: {}]   ;;  %s997_s2 = inlined_call_operand.vmem [shape: f32[1,128], index: 2, kind: input, shape index: {}]   ;;  %s998_s3 = inlined_call_operand.hbm [shape: f32[2,16,128], index: 3, kind: output, shape index: {}]  }
   0x1   :  { %9 = vsyncpa [#allocation4], 0 }
   0x2   :  { %11 = vsyncpa [#allocation4 + $0x1], 0  ;;  %s856_s12 = smov 0   ;;  %s858_s13 = smov 0  }
   0x3   :  { %s860_s14 = smov 0   ;;  %s862_s15 = smov 0  }
   0x4 LB: > { %s877_s16 = sadd.s32 4294967295, %s828_s15   ;;  %s566_s17 = sadd.s32 4294967294, %s828_s15   ;;  %s828_s15 = sphi %s862_s15, %s1006_s15   ;;  %s824_s14 = sphi %s860_s14, %s1005_s14   ;;  %s820_s13 = sphi %s858_s13, %s1004_s13   ;;  %s816_s12 = sphi %s856_s12, %s1003_s12  }
   0x5   : > { %s881_s18 = sadd.s32 1, %s828_s15   ;;  %s92_s19 = sadd.s32 1, %s824_s14 }
   0x6   : > { %s89_s20 = ssub.s32 %s828_s15, %s881_s18  ;;  %p102_p0 = scmp.ne.s32.totalorder %s824_s14, %s820_s13 }
   0x7   : > { %p90_p1 = scmp.eq.s32.totalorder %s89_s20, 0  ;;  %p103_p2 = scmp.eq.s32.totalorder %s877_s16, 1 }
   0x8   : > { %p108_p3 = scmp.ne.s32.totalorder %s820_s13, %s816_s12  ;;  %p109_p4 = scmp.eq.s32.totalorder %s566_s17, 1 }
   0x9   : > { %s892_s21 = scalar_select %p90_p1, %s824_s14, %s92_s19  }
   0xa   : > { %p894_p5 = por %p103_p2, %p102_p0  ;;  %p898_p6 = por %p109_p4, %p108_p3 }
   0xb   : > { %p567_p7 = scmp.ge.s32.totalorder %s828_s15, 1  ;;  %p116_p8 = scmp.lt.s32.totalorder %s828_s15, 3 }
   0xc   : > { %s1000_s23 = scalar_select %p898_p6, 1, 0 }
   0xd   : > { %p698_p9 = scmp.eq.s32.totalorder %s877_s16, 0  ;;  %p905_p10 = pnand %p567_p7, %p116_p8 }
   0xe   : > { %s830_s25 = smov [#allocation2]  }
   0xf   : > { %s128_s26 = sshll.u32 %s830_s25, 4  ;;  %p690_p11 = pneg %p905_p10  ;;  %s129_s26 = int_to_ptr.vmem [resolvable:$true] %s128_s26 }
  0x10   : > { %s749_s27 = scalar_lea.vmem %s129_s26, 3456  ;;  %p757_p3 = scmp.lt.s32.totalorder %s129_s26, %s129_s26 }
  0x11   : > { %p691_p12 = pnand %p698_p9, %p690_p11  ;;  %p750_p0 = scmp.ne.s32.totalorder %s129_s26, %s749_s27 }
  0x12   : > { %p758_p4 = scmp.lt.s32.totalorder %s749_s27, %s749_s27 }
  0x13   : > { %p740_p13 = pneg %p691_p12 }
  0x14   : > { %p759_p6 = por %p758_p4, %p757_p3 }
  0x15   : > { %p752_p1 = pnand %p750_p0, %p740_p13 }
  0x17   : > { %p753_p2 = pneg %p752_p1 }
  0x19   : > { %p760_p7 = pnand %p759_p6, %p753_p2 }
  0x1b   : > { %763 = shalt.err (!%p760_p7)
}
  0x1c   : > { %s831_s28 = smov 128   ;;  %s832_s29 = smov 8  }
  0x1d   : > { %693 = dma.hbm_to_vmem [thread:$0]  (!%p691_p12), %s996_s1, 3456, %s129_s26, [#allocation3], %s831_s28, %s831_s28, %s832_s29  }
  0x1e   : > { %155 = sbr.rel (%p905_p10) target bundleno = 290 (0x122), region = 32 }
  0x23   : > { %807 = dma.done.wait (%p698_p9), [#allocation3], 3456  }
  0x24   : > { %809 = vsyncadd (%p698_p9), [#allocation3], 4294963840  ;;  %v206_v0 = vld [vmem:[#allocation2 + $0x88] sm:$0xff]  ;;  %v194_v1 = vld [vmem:[#allocation2 + $0x40] sm:$0xff]  ;;  %p179_p6 = scmp.lt.s32.totalorder %s877_s16, 1  ;;  %vm207_vm0 = vcmask 588800  }
  0x25   : > { %v205_v2 = vld [vmem:[#allocation2 + $0x80] sm:$0xff]  ;;  %620 = vmatprep.subr.mxu0 %v206_v0  ;;  %641 = vmatprep.subr.mxu1 %v194_v1  ;;  %v193_v3 = vld [vmem:[#allocation2 + $0x38] sm:$0xff]  ;;  %v192_v5 = vld [vmem:[#allocation2 + $0x30] sm:$0xff]  ;;  %s176_s10 = sand.u32 1, %s820_s13   ;;  %s586_s25 = sshll.u32 %s877_s16, 8 }
  0x26   : > { %621 = vmatpush3.msra.mxu0 %v206_v0  ;;  %642 = vmatpush3.msra.mxu1 %v194_v1  ;;  %v204_v4 = vld [vmem:[#allocation2 + $0x78] sm:$0xff]  ;;  %v203_v6 = vld [vmem:[#allocation2 + $0x70] sm:$0xff]  ;;  %v191_v7 = vld [vmem:[#allocation2 + $0x28] sm:$0xff]  ;;  %s180_s5 = scalar_select %p179_p6, %s877_s16, 1 }
  0x27   : > { %622 = vmatprep.subr.mxu0 %v205_v2  ;;  %643 = vmatprep.subr.mxu1 %v193_v3  ;;  %v202_v8 = vld [vmem:[#allocation2 + $0x68] sm:$0xff]  ;;  %v190_v9 = vld [vmem:[#allocation2 + $0x20] sm:$0xff]  ;;  %v189_v11 = vld [vmem:[#allocation2 + $0x18] sm:$0xff]  ;;  %s572_s11 = sshll.u32 %s176_s10, 4  ;;  %s953_s28 = scalar_lea.hbm %s998_s3, %s586_s25 }
  0x28   : > { %623 = vmatpush3.msra.mxu0 %v205_v2  ;;  %644 = vmatpush3.msra.mxu1 %v193_v3  ;;  %v201_v10 = vld [vmem:[#allocation2 + $0x60] sm:$0xff]  ;;  %s683_s6 = smul.u32 24, %s180_s5  ;;  %v200_v12 = vld [vmem:[#allocation2 + $0x58] sm:$0xff]  ;;  %v188_v13 = vld [vmem:[#allocation2 + $0x10] sm:$0xff]  ;;  %s178_s20 = scalar_lea.vmem [#allocation5], %s572_s11 }
  0x29   : > { %624 = vmatprep.subr.mxu0 %v204_v4  ;;  %645 = vmatprep.subr.mxu1 %v192_v5  ;;  %v199_v14 = vld [vmem:[#allocation2 + $0x50] sm:$0xff]  ;;  %v187_v15 = vld [vmem:[#allocation2 + $0x8] sm:$0xff]  ;;  %v186_v17 = vld [vmem:[#allocation2] sm:$0xff]  ;;  %s492_s24 = sshll.u32 %s178_s20, 4  ;;  %s955_s29 = scalar_lea.sflag [#allocation4], %s176_s10  ;;  %s948_s24 = int_to_ptr.vmem [resolvable:$true] %s492_s24 }
  0x2a   : > { %625 = vmatpush3.msra.mxu0 %v204_v4  ;;  %646 = vmatpush3.msra.mxu1 %v192_v5  ;;  %s929_s9 = scalar_lea.vmem %s995_s0, %s683_s6  ;;  %v198_v16 = vld [vmem:[#allocation2 + $0x48] sm:$0xff]  ;;  %v381_v22 = vld [vmem:[#allocation2 + $0xd0] sm:$0xff]  ;;  %v379_v25 = vld [vmem:[#allocation2 + $0xc0] sm:$0xff]  ;;  %s764_s30 = scalar_lea.vmem %s948_s24, 256 }
  0x2b   : > { %626 = vmatprep.subr.mxu0 %v203_v6  ;;  %647 = vmatprep.subr.mxu1 %v191_v7  ;;  %v195_v18 = vld [vmem:[%s929_s9 + $0x1] sm:$0xff]  ;;  %v196_v20 = vld [vmem:[%s929_s9 + $0x9] sm:$0xff]  ;;  %v378_v26 = vld [vmem:[#allocation2 + $0xb8] sm:$0xff]  ;;  %p765_p8 = scmp.ne.s32.totalorder %s948_s24, %s764_s30  ;;  %s833_s16 = smov [#allocation5]  }
  0x2c   : > { %627 = vmatpush3.msra.mxu0 %v203_v6  ;;  %648 = vmatpush3.msra.mxu1 %v191_v7  ;;  %v184_v19 = vld [vmem:[%s929_s9] sm:$0xff]  ;;  %v185_v21 = vld [vmem:[%s929_s9 + $0x8] sm:$0xff]  ;;  %v377_v27 = vld [vmem:[#allocation2 + $0xb0] sm:$0xff]  ;;  %s768_s4 = sshll.u32 %s833_s16, 4  ;;  %s769_s4 = int_to_ptr.vmem [resolvable:$false] %s768_s4 }
  0x2d   : > { %628 = vmatprep.subr.mxu0 %v202_v8  ;;  %649 = vmatprep.subr.mxu1 %v190_v9  ;;  %v370_v23 = vld [vmem:[%s929_s9 + $0x2] sm:$0xff]  ;;  %v374_v30 = vld [vmem:[#allocation2 + $0x98] sm:$0xff]  ;;  %v373_v31 = vld [vmem:[#allocation2 + $0x90] sm:$0xff]  ;;  %p766_p9 = pnand %p765_p8, %p894_p5  ;;  %s770_s5 = scalar_lea.vmem %s769_s4, 512 }
  0x2e   : > { %629 = vmatpush3.msra.mxu0 %v202_v8  ;;  %650 = vmatpush3.msra.mxu1 %v190_v9  ;;  %v380_v24 = vld [vmem:[#allocation2 + $0xc8] sm:$0xff]  ;;  %v375_v29 = vld [vmem:[#allocation2 + $0xa0] sm:$0xff]  ;;  %p771_p11 = scmp.lt.s32.totalorder %s948_s24, %s769_s4  ;;  %p772_p12 = scmp.lt.s32.totalorder %s770_s5, %s764_s30 }
  0x2f   : > { %630 = vmatprep.subr.mxu0 %v201_v10  ;;  %651 = vmatprep.subr.mxu1 %v189_v11  ;;  %v376_v28 = vld [vmem:[#allocation2 + $0xa8] sm:$0xff]  ;;  %v580_v39 = vld [vmem:[%s997_s2] ss:$0 sm:$0xff]  ;;  %p767_p10 = pneg %p766_p9 }
  0x30   : > { %631 = vmatpush3.msra.mxu0 %v201_v10  ;;  %652 = vmatpush3.msra.mxu1 %v189_v11  ;;  %v371_v32 = vld [vmem:[%s929_s9 + $0xa] sm:$0xff]  ;;  %p773_p13 = por %p772_p12, %p771_p11 }
  0x31   : > { %632 = vmatprep.subr.mxu0 %v200_v12  ;;  %653 = vmatprep.subr.mxu1 %v188_v13 }
  0x32   : > { %633 = vmatpush3.msra.mxu0 %v200_v12  ;;  %654 = vmatpush3.msra.mxu1 %v188_v13  ;;  %p774_p0 = pnand %p773_p13, %p767_p10 }
  0x33   : > { %634 = vmatprep.subr.mxu0 %v199_v14  ;;  %655 = vmatprep.subr.mxu1 %v187_v15 }
  0x34   : > { %635 = vmatpush3.msra.mxu0 %v199_v14  ;;  %656 = vmatpush3.msra.mxu1 %v187_v15 }
  0x35   : > { %636 = vmatprep.subr.mxu0 %v198_v16  ;;  %657 = vmatprep.subr.mxu1 %v186_v17 }
  0x36   : > { %637 = vmatpush3.msra.mxu0 %v198_v16  ;;  %638 = vmatprep.mubr.msk.f32.mxu0 %vm207_vm0, %v195_v18 }
  0x37   : > { %658 = vmatpush3.msra.mxu1 %v186_v17  ;;  %659 = vmatprep.mubr.msk.f32.mxu1 %vm207_vm0, %v184_v19 }
  0x38   : > { %639 = vmatmul.mubr.msk.f32.vlgmr.msra.gmra.mxu0 %vm207_vm0, %v196_v20  ;;  %660 = vmatmul.mubr.msk.f32.vlgmr.msra.gmra.mxu1 %vm207_vm0, %v185_v21 }
  0x39   : > { %662 = vmatprep.subr.mxu0 %v381_v22  ;;  %680 = vmatprep.mubr.msk.f32.mxu0 %vm207_vm0, %v370_v23 }
  0x3a   : > { %663 = vmatpush3.msra.mxu0 %v381_v22 }
  0x3b   : > { %664 = vmatprep.subr.mxu0 %v380_v24 }
  0x3c   : > { %665 = vmatpush3.msra.mxu0 %v380_v24 }
  0x3d   : > { %666 = vmatprep.subr.mxu0 %v379_v25 }
  0x3e   : > { %667 = vmatpush3.msra.mxu0 %v379_v25 }
  0x3f   : > { %668 = vmatprep.subr.mxu0 %v378_v26 }
  0x40   : > { %669 = vmatpush3.msra.mxu0 %v378_v26 }
  0x41   : > { %670 = vmatprep.subr.mxu0 %v377_v27 }
  0x42   : > { %671 = vmatpush3.msra.mxu0 %v377_v27 }
  0x43   : > { %672 = vmatprep.subr.mxu0 %v376_v28 }
  0x44   : > { %673 = vmatpush3.msra.mxu0 %v376_v28 }
  0x45   : > { %674 = vmatprep.subr.mxu0 %v375_v29 }
  0x46   : > { %675 = vmatpush3.msra.mxu0 %v375_v29 }
  0x47   : > { %676 = vmatprep.subr.mxu0 %v374_v30 }
  0x48   : > { %677 = vmatpush3.msra.mxu0 %v374_v30 }
  0x49   : > { %678 = vmatprep.subr.mxu0 %v373_v31 }
  0x4a   : > { %679 = vmatpush3.msra.mxu0 %v373_v31 }
  0x4b   : > { %681 = vmatmul.mubr.msk.f32.vlgmr.msra.gmra.mxu0 %vm207_vm0, %v371_v32 }
  0xf8   : > { %v640_v33 = vpop.f32.mrf.mxu0  ;;  %v661_v34 = vpop.f32.mrf.mxu1 }
  0xf9   : > { %v367_v37 = vadd.f32 %v661_v34, %v640_v33 }
  0xfa   : > { %v280_v35 = vpop.f32.mrf.mxu0  ;;  %v361_v36 = vpop.f32.mrf.mxu1 }
  0xfb   : > { %v362_v40 = vadd.f32 %v361_v36, %v280_v35 }
 0x10b   : > { %v682_v38 = vpop.f32.mrf.mxu0 }
 0x10c   : > { %v464_v41 = vadd.f32 %v682_v38, %v367_v37 }
 0x10d   : > { %v454_v42 = vpop.f32.mrf.mxu0 }
 0x10e   : > { %v473_v43 = vadd.f32 %v580_v39, %v464_v41  ;;  %v463_v44 = vadd.f32 %v454_v42, %v362_v40 }
 0x110   : > { %v475_v45 = vmax.f32 %v473_v43, 0.0  ;;  %v472_v46 = vadd.f32 %v580_v39, %v463_v44 }
 0x112   : > { %477 = vst [vmem:[%s178_s20 + $0x8] sm:$0xff] %v475_v45  ;;  %v474_v47 = vmax.f32 %v472_v46, 0.0 }
 0x114   : > { %476 = vst [vmem:[%s178_s20] sm:$0xff] %v474_v47 }
 0x115   : > { %777 = shalt.err (!%p774_p0)
}
 0x116   : > { %s778_s6 = scalar_lea.hbm %s953_s28, 256  ;;  %s782_s9 = scalar_lea.hbm %s998_s3, 512 }
 0x117   : > { %p779_p1 = scmp.ne.s32.totalorder %s953_s28, %s778_s6  ;;  %p783_p4 = scmp.lt.s32.totalorder %s953_s28, %s998_s3 }
 0x118   : > { %p784_p7 = scmp.lt.s32.totalorder %s782_s9, %s778_s6 }
 0x119   : > { %p780_p2 = pnand %p779_p1, %p894_p5 }
 0x11a   : > { %p785_p6 = por %p784_p7, %p783_p4 }
 0x11b   : > { %p781_p3 = pneg %p780_p2 }
 0x11d   : > { %p786_p8 = pnand %p785_p6, %p781_p3 }
 0x11f   : > { %789 = shalt.err (!%p786_p8)
}
 0x120   : > { %s834_s17 = smov 128   ;;  %s835_s19 = smov 8  }
 0x121   : > { %688 = dma.vmem_to_hbm [thread:$0]  (%p894_p5), %s948_s24, 256, %s953_s28, %s955_s29, %s834_s17, %s834_s17, %s835_s19  }
 0x122 PF: > { %p700_p9 = scmp.ge.s32.totalorder %s828_s15, 2  ;;  %s507_s20 = sand.u32 1, %s816_s12  }
 0x123   : > { %p1002_p10 = scmp.ne.s32.totalorder %s1000_s23, 0  ;;  %s508_s25 = scalar_lea.sflag [#allocation4], %s507_s20 }
 0x125   : > { %p695_p11 = pnand %p700_p9, %p1002_p10 }
 0x127   : > { %p696_p12 = pneg %p695_p11 }
 0x129   : > { %811 = dma.done.wait (%p696_p12), %s508_s25, 256  }
 0x12a   : > { %813 = vsyncadd (%p696_p12), %s508_s25, 4294967040  ;;  %p14_p13 = scmp.ge.s32.totalorder %s881_s18, 4   ;;  %s1003_s12 = smov %s820_s13 }
 0x12b   : > { %s1004_s13 = smov %s824_s14  ;;  %s1005_s14 = smov %s892_s21 }
 0x12c   : > { %s1006_s15 = smov %s881_s18  ;;  %16 = sbr.rel (!%p14_p13) target bundleno = 4 (0x4), region = 74 }
 0x131   :  { %513 = vsyncpa [#allocation3], 1 }
 0x132   :  { %515 = vsyncpa [#allocation3 + $0x1], 1 }
 0x133   :  { %516 = vsyncpa [#allocation4], 1 }
 0x134   :  { %518 = vsyncpa [#allocation4 + $0x1], 1 }

</bundles_post_ra>
